<compile_context>
chip_gen: v6e
topology: v6e:2x2x1
jax: 0.10.0
libtpu: 0.0.40
codegen_flags: <defaults>
</compile_context>

<pallas_src>
import functools
import math

import jax
import jax.numpy as jnp
from jax.experimental import pallas as pl
from jax.experimental.pallas import tpu as pltpu


def _round_up(x, m):
    return ((x + m - 1) // m) * m


def _pair(v):
    return (v, v) if isinstance(v, int) else tuple(v)


# ----------------------------------------------------------------------------
# Generation-aware budgets
# ----------------------------------------------------------------------------

def _tpu_vmem_capacity():
    try:
        info = pltpu.get_tpu_info()
        for attr in ("vmem_capacity_bytes", "vmem_size_bytes", "vmem_bytes"):
            v = getattr(info, attr, None)
            if v:
                return int(v)
    except Exception:
        pass
    return 128 * 1024 * 1024


_VMEM_CAPACITY = _tpu_vmem_capacity()
_BIG_VMEM = _VMEM_CAPACITY >= 100 * 1024 * 1024          # v5e/v6e True, v7x False
_VMEM_LIMIT = (64 if _BIG_VMEM else 40) * 1024 * 1024    # scoped VMEM budget
_TM_CAP = 512 if _BIG_VMEM else 256                      # max rows per M tile
_SINGLE_DOT_K = 4608                                     # covers 9*448, 9*512


def _pick_tm(M, cap):
    m8 = _round_up(max(M, 1), 8)
    if m8 <= cap:
        return m8
    for t in (cap, 256, 128):
        if t <= cap and m8 >= 2 * t:
            return t
    return min(m8, cap)


# ----------------------------------------------------------------------------
# Pallas kernels
# ----------------------------------------------------------------------------

def _matmul_bn_act_kernel(a_ref, w_ref, s_ref, b_ref, o_ref, *, apply_relu):
    # Single-tap fast path: one bf16 MXU dot (f32 acc) + fused scale/bias/ReLU.
    y = jnp.dot(a_ref[0], w_ref[0], preferred_element_type=jnp.float32)
    y = y * s_ref[...] + b_ref[...]
    if apply_relu:
        y = jnp.maximum(y, 0.0)
    o_ref[...] = y.astype(o_ref.dtype)


def _matmul_bn_act_acc_kernel(a_ref, w_ref, s_ref, b_ref, o_ref, acc_ref, *,
                              apply_relu, nk):
    # Multi-tap (K reduction) path: accumulate in a VMEM f32 scratch, finalize
    # on the last tap with scale/bias (+ ReLU) and a single lane-dense store.
    k = pl.program_id(2)

    @pl.when(k == 0)
    def _():
        acc_ref[...] = jnp.zeros_like(acc_ref)

    acc_ref[...] += jnp.dot(a_ref[0], w_ref[0],
                            preferred_element_type=jnp.float32)

    @pl.when(k == nk - 1)
    def _():
        y = acc_ref[...] * s_ref[...] + b_ref[...]
        if apply_relu:
            y = jnp.maximum(y, 0.0)
        o_ref[...] = y.astype(o_ref.dtype)


def _pool_kernel(x_ref, o_ref, *, op, inv_count):
    x = x_ref[...].astype(jnp.float32)            # (KK, TMp, C) window stack
    if op == "max":
        r = jnp.max(x, axis=0)
    else:
        r = jnp.sum(x, axis=0) * inv_count
    o_ref[...] = r.astype(o_ref.dtype)


# ----------------------------------------------------------------------------
# Pallas wrappers
# ----------------------------------------------------------------------------

def conv_matmul(a, w, scale, bias, *, apply_relu=True, out_dtype=jnp.float32):
    """(sum_k a[k] @ w[k]) * scale + bias (+ ReLU).

    a: (KK, M, Cin) activations (cast to bf16), w: (KK, Cin, Cout) bf16,
    scale/bias: (Cout,) f32 folded BatchNorm (or 1 / fc bias).
    """
    KK, M, Cin = a.shape
    Cout = w.shape[-1]

    # Lane-dense output tiling: pad Cout to a 128 multiple, tile by TN.
    cp = _round_up(Cout, 128)
    if cp <= 512:
        Cout_pad, TN = cp, cp
    else:
        Cout_pad, TN = _round_up(Cout, 256), 256

    TM = _pick_tm(M, _TM_CAP)
    M_pad = _round_up(M, TM)

    a = a.astype(jnp.bfloat16)
    w = w.astype(jnp.bfloat16)
    if M_pad != M:
        a = jnp.pad(a, ((0, 0), (0, M_pad - M), (0, 0)))
    if Cout_pad != Cout:
        w = jnp.pad(w, ((0, 0), (0, 0), (0, Cout_pad - Cout)))
        scale = jnp.pad(scale, (0, Cout_pad - Cout))
        bias = jnp.pad(bias, (0, Cout_pad - Cout))
    s2 = scale.reshape(1, Cout_pad).astype(jnp.float32)
    b2 = bias.reshape(1, Cout_pad).astype(jnp.float32)

    grid = (M_pad // TM, Cout_pad // TN, KK)
    in_specs = [
        pl.BlockSpec((1, TM, Cin), lambda i, j, k: (k, i, 0)),
        pl.BlockSpec((1, Cin, TN), lambda i, j, k: (k, 0, j)),
        pl.BlockSpec((1, TN), lambda i, j, k: (0, j)),
        pl.BlockSpec((1, TN), lambda i, j, k: (0, j)),
    ]
    out_spec = pl.BlockSpec((TM, TN), lambda i, j, k: (i, j))

    if KK == 1:
        kernel = functools.partial(_matmul_bn_act_kernel, apply_relu=apply_relu)
        scratch = ()
    else:
        kernel = functools.partial(_matmul_bn_act_acc_kernel,
                                   apply_relu=apply_relu, nk=KK)
        scratch = (pltpu.VMEM((TM, TN), jnp.float32),)

    out = pl.pallas_call(
        kernel,
        out_shape=jax.ShapeDtypeStruct((M_pad, Cout_pad), out_dtype),
        grid=grid,
        in_specs=in_specs,
        out_specs=out_spec,
        scratch_shapes=scratch,
        compiler_params=pltpu.CompilerParams(
            dimension_semantics=("parallel", "parallel", "arbitrary"),
            vmem_limit_bytes=_VMEM_LIMIT,
        ),
    )(a, w, s2, b2)
    if M_pad != M or Cout_pad != Cout:
        out = out[:M, :Cout]
    return out


def _pool_reduce(stacked, op, inv_count):
    """stacked: (KK, M, C) pooling windows -> (M, C) reduced (max / mean)."""
    KK, M, C = stacked.shape
    itemsize = jnp.dtype(stacked.dtype).itemsize
    m8 = _round_up(M, 8)
    budget_rows = (2 * 1024 * 1024) // max(KK * C * itemsize, 1)
    TMp = min(m8, max(8, (budget_rows // 8) * 8), 2048)
    M_pad = _round_up(M, TMp)
    if M_pad != M:
        stacked = jnp.pad(stacked, ((0, 0), (0, M_pad - M), (0, 0)))
    out = pl.pallas_call(
        functools.partial(_pool_kernel, op=op, inv_count=inv_count),
        out_shape=jax.ShapeDtypeStruct((M_pad, C), stacked.dtype),
        grid=(M_pad // TMp,),
        in_specs=[pl.BlockSpec((KK, TMp, C), lambda i: (0, i, 0))],
        out_specs=pl.BlockSpec((TMp, C), lambda i: (i, 0)),
        compiler_params=pltpu.CompilerParams(
            dimension_semantics=("parallel",),
            vmem_limit_bytes=_VMEM_LIMIT,
        ),
    )(stacked)
    return out[:M]


# ----------------------------------------------------------------------------
# Glue: window extraction, conv / pool entry points (jitted so pad/slice/stack
# fuse into single XLA fusions around each pallas_call).
# ----------------------------------------------------------------------------

def _extract_windows(x, kh, kw, sh, sw):
    # x: (N, H, W, C), already padded. Returns (kh*kw, N*Ho*Wo, C).
    N, H, W, C = x.shape
    Ho = (H - kh) // sh + 1
    Wo = (W - kw) // sw + 1
    views = []
    for i in range(kh):
        for j in range(kw):
            v = x[:, i:i + (Ho - 1) * sh + 1:sh, j:j + (Wo - 1) * sw + 1:sw, :]
            views.append(v.reshape(N * Ho * Wo, C))
    return jnp.stack(views, axis=0), (N, Ho, Wo, C)


@functools.partial(jax.jit, static_argnames=("kh", "kw", "stride", "padding"))
def _conv_impl(x, wk, scale, bias, *, kh, kw, stride, padding):
    """BasicConv2d: conv (no bias) + folded BatchNorm(eps=1e-3) + ReLU, NHWC."""
    sh, sw = stride
    ph, pw = padding
    if ph or pw:
        x = jnp.pad(x, ((0, 0), (ph, ph), (pw, pw), (0, 0)))
    N, H, W, C = x.shape
    Ho = (H - kh) // sh + 1
    Wo = (W - kw) // sw + 1
    M = N * Ho * Wo
    KK = kh * kw

    if KK == 1 and sh == 1 and sw == 1:
        a = x.reshape(1, M, C)                      # 1x1: no im2col at all
        wmat = wk
    else:
        taps = []
        for i in range(kh):
            for j in range(kw):
                v = x[:, i:i + (Ho - 1) * sh + 1:sh,
                      j:j + (Wo - 1) * sw + 1:sw, :]
                taps.append(v.reshape(M, C))
        if KK * C <= _SINGLE_DOT_K:
            # im2col, single MXU dot per tile (no scratch, no K grid axis).
            a = jnp.concatenate(taps, axis=1).reshape(1, M, KK * C)
            wmat = wk.reshape(1, KK * C, wk.shape[-1])
        else:
            # Very large K: tap-by-tap reduction on a K grid axis (bounded VMEM).
            a = jnp.stack(taps, axis=0)
            wmat = wk
    y = conv_matmul(a, wmat, scale, bias, apply_relu=True,
                    out_dtype=jnp.bfloat16)
    return y.reshape(N, Ho, Wo, wk.shape[-1])


def basic_conv(x, layer):
    return _conv_impl(x, layer["wk"], layer["scale"], layer["bias"],
                      kh=layer["kh"], kw=layer["kw"],
                      stride=layer["stride"], padding=layer["padding"])


@functools.partial(jax.jit, static_argnames=("k", "s"))
def _max_pool_impl(x, *, k, s):
    # F.max_pool2d(kernel_size=3, stride=2), no padding, floor mode.
    stacked, (N, Ho, Wo, C) = _extract_windows(x, k, k, s, s)
    return _pool_reduce(stacked, "max", 0.0).reshape(N, Ho, Wo, C)


@jax.jit
def _avg_pool_3x3_impl(x):
    # F.avg_pool2d(kernel_size=3, stride=1, padding=1), count_include_pad=True.
    xp = jnp.pad(x, ((0, 0), (1, 1), (1, 1), (0, 0)))
    stacked, (N, Ho, Wo, C) = _extract_windows(xp, 3, 3, 1, 1)
    return _pool_reduce(stacked, "avg", 1.0 / 9.0).reshape(N, Ho, Wo, C)


@jax.jit
def _global_avg_pool_impl(x):
    # AdaptiveAvgPool2d((1,1)) + flatten.
    N, H, W, C = x.shape
    stacked = x.reshape(N, H * W, C).transpose(1, 0, 2)   # (H*W, N, C)
    return _pool_reduce(stacked, "avg", 1.0 / (H * W))    # (N, C)


def max_pool2d(x, k=3, s=2):
    return _max_pool_impl(x, k=k, s=s)


def avg_pool_3x3_s1_p1(x):
    return _avg_pool_3x3_impl(x)


def global_avg_pool(x):
    return _global_avg_pool_impl(x)


def _split_channels(y, splits):
    outs, off = [], 0
    for s in splits:
        outs.append(y[..., off:off + s])
        off += s
    return outs


# ----------------------------------------------------------------------------
# Deterministic parameter construction (shapes mirror Inception3.__init__)
# ----------------------------------------------------------------------------

class ParamGen:
    def __init__(self, seed=0):
        self.key = jax.random.PRNGKey(seed)
        self.count = 0

    def next(self):
        self.count += 1
        return jax.random.fold_in(self.key, self.count)


def make_basic_conv(pg, cin, cout, kernel_size, stride=1, padding=0, eps=1e-3):
    kh, kw = _pair(kernel_size)
    fan_in = cin * kh * kw
    w = jax.random.normal(pg.next(), (kh, kw, cin, cout), jnp.float32)
    w = w * math.sqrt(2.0 / fan_in)
    gamma = 1.0 + 0.1 * jax.random.normal(pg.next(), (cout,), jnp.float32)
    beta = 0.1 * jax.random.normal(pg.next(), (cout,), jnp.float32)
    mean = 0.1 * jax.random.normal(pg.next(), (cout,), jnp.float32)
    var = 1.0 + 0.1 * jax.random.uniform(pg.next(), (cout,), jnp.float32)
    scale = gamma / jnp.sqrt(var + eps)              # folded eval-mode BatchNorm
    bias = beta - mean * scale
    wk = w.reshape(kh * kw, cin, cout).astype(jnp.bfloat16)   # tap-major, bf16
    return {"wk": wk, "scale": scale, "bias": bias, "kh": kh, "kw": kw,
            "stride": _pair(stride), "padding": _pair(padding)}


def fuse_1x1(layers):
    """Fuse several 1x1 convs reading the same input into one wide matmul."""
    return {"wk": jnp.concatenate([l["wk"] for l in layers], axis=-1),
            "scale": jnp.concatenate([l["scale"] for l in layers]),
            "bias": jnp.concatenate([l["bias"] for l in layers]),
            "kh": 1, "kw": 1, "stride": (1, 1), "padding": (0, 0),
            "splits": tuple(int(l["wk"].shape[-1]) for l in layers)}


def make_inception_a(pg, cin, pool_features):
    p = {
        "branch1x1": make_basic_conv(pg, cin, 64, 1),
        "branch5x5_1": make_basic_conv(pg, cin, 48, 1),
        "branch5x5_2": make_basic_conv(pg, 48, 64, 5, padding=2),
        "branch3x3dbl_1": make_basic_conv(pg, cin, 64, 1),
        "branch3x3dbl_2": make_basic_conv(pg, 64, 96, 3, padding=1),
        "branch3x3dbl_3": make_basic_conv(pg, 96, 96, 3, padding=1),
        "branch_pool": make_basic_conv(pg, cin, pool_features, 1),
    }
    p["stem_1x1"] = fuse_1x1([p["branch1x1"], p["branch5x5_1"],
                              p["branch3x3dbl_1"]])
    return p


def make_inception_b(pg, cin):
    return {
        "branch3x3": make_basic_conv(pg, cin, 384, 3, stride=2),
        "branch3x3dbl_1": make_basic_conv(pg, cin, 64, 1),
        "branch3x3dbl_2": make_basic_conv(pg, 64, 96, 3, padding=1),
        "branch3x3dbl_3": make_basic_conv(pg, 96, 96, 3, stride=2),
    }


def make_inception_c(pg, cin, c7):
    p = {
        "branch1x1": make_basic_conv(pg, cin, 192, 1),
        "branch7x7_1": make_basic_conv(pg, cin, c7, 1),
        "branch7x7_2": make_basic_conv(pg, c7, c7, (1, 7), padding=(0, 3)),
        "branch7x7_3": make_basic_conv(pg, c7, 192, (7, 1), padding=(3, 0)),
        "branch7x7dbl_1": make_basic_conv(pg, cin, c7, 1),
        "branch7x7dbl_2": make_basic_conv(pg, c7, c7, (7, 1), padding=(3, 0)),
        "branch7x7dbl_3": make_basic_conv(pg, c7, c7, (1, 7), padding=(0, 3)),
        "branch7x7dbl_4": make_basic_conv(pg, c7, c7, (7, 1), padding=(3, 0)),
        "branch7x7dbl_5": make_basic_conv(pg, c7, 192, (1, 7), padding=(0, 3)),
        "branch_pool": make_basic_conv(pg, cin, 192, 1),
    }
    p["stem_1x1"] = fuse_1x1([p["branch1x1"], p["branch7x7_1"],
                              p["branch7x7dbl_1"]])
    return p


def make_inception_d(pg, cin):
    p = {
        "branch3x3_1": make_basic_conv(pg, cin, 192, 1),
        "branch3x3_2": make_basic_conv(pg, 192, 320, 3, stride=2),
        "branch7x7x3_1": make_basic_conv(pg, cin, 192, 1),
        "branch7x7x3_2": make_basic_conv(pg, 192, 192, (1, 7), padding=(0, 3)),
        "branch7x7x3_3": make_basic_conv(pg, 192, 192, (7, 1), padding=(3, 0)),
        "branch7x7x3_4": make_basic_conv(pg, 192, 192, 3, stride=2),
    }
    p["stem_1x1"] = fuse_1x1([p["branch3x3_1"], p["branch7x7x3_1"]])
    return p


def make_inception_e(pg, cin):
    p = {
        "branch1x1": make_basic_conv(pg, cin, 320, 1),
        "branch3x3_1": make_basic_conv(pg, cin, 384, 1),
        "branch3x3_2a": make_basic_conv(pg, 384, 384, (1, 3), padding=(0, 1)),
        "branch3x3_2b": make_basic_conv(pg, 384, 384, (3, 1), padding=(1, 0)),
        "branch3x3dbl_1": make_basic_conv(pg, cin, 448, 1),
        "branch3x3dbl_2": make_basic_conv(pg, 448, 384, 3, padding=1),
        "branch3x3dbl_3a": make_basic_conv(pg, 384, 384, (1, 3), padding=(0, 1)),
        "branch3x3dbl_3b": make_basic_conv(pg, 384, 384, (3, 1), padding=(1, 0)),
        "branch_pool": make_basic_conv(pg, cin, 192, 1),
    }
    p["stem_1x1"] = fuse_1x1([p["branch1x1"], p["branch3x3_1"],
                              p["branch3x3dbl_1"]])
    return p


def make_inception3(pg, num_classes=1000):
    p = {}
    p["Conv2d_1a_3x3"] = make_basic_conv(pg, 3, 32, 3, stride=2)
    p["Conv2d_2a_3x3"] = make_basic_conv(pg, 32, 32, 3)
    p["Conv2d_2b_3x3"] = make_basic_conv(pg, 32, 64, 3, padding=1)
    p["Conv2d_3b_1x1"] = make_basic_conv(pg, 64, 80, 1)
    p["Conv2d_4a_3x3"] = make_basic_conv(pg, 80, 192, 3)
    p["Mixed_5b"] = make_inception_a(pg, 192, 32)
    p["Mixed_5c"] = make_inception_a(pg, 256, 64)
    p["Mixed_5d"] = make_inception_a(pg, 288, 64)
    p["Mixed_6a"] = make_inception_b(pg, 288)
    p["Mixed_6b"] = make_inception_c(pg, 768, 128)
    p["Mixed_6c"] = make_inception_c(pg, 768, 160)
    p["Mixed_6d"] = make_inception_c(pg, 768, 160)
    p["Mixed_6e"] = make_inception_c(pg, 768, 192)
    # TODO(synk): AuxLogits (InceptionAux) only runs in training mode; the
    # eval-mode forward implemented here skips it, matching PyTorch.
    p["Mixed_7a"] = make_inception_d(pg, 768)
    p["Mixed_7b"] = make_inception_e(pg, 1280)
    p["Mixed_7c"] = make_inception_e(pg, 2048)
    fc_w = 0.01 * jax.random.normal(pg.next(), (2048, num_classes), jnp.float32)
    p["fc_wk"] = fc_w.reshape(1, 2048, num_classes).astype(jnp.bfloat16)
    p["fc_scale"] = jnp.ones((num_classes,), jnp.float32)
    p["fc_b"] = jnp.zeros((num_classes,), jnp.float32)
    return p


# ----------------------------------------------------------------------------
# Block forwards
# ----------------------------------------------------------------------------

def inception_a(x, p):
    f = p["stem_1x1"]                                 # branch1x1 | 5x5_1 | dbl_1
    b1, b5, b3 = _split_channels(basic_conv(x, f), f["splits"])
    b5 = basic_conv(b5, p["branch5x5_2"])
    b3 = basic_conv(basic_conv(b3, p["branch3x3dbl_2"]), p["branch3x3dbl_3"])
    bp = basic_conv(avg_pool_3x3_s1_p1(x), p["branch_pool"])
    return jnp.concatenate([b1, b5, b3, bp], axis=-1)


def inception_b(x, p):
    b3 = basic_conv(x, p["branch3x3"])
    bd = basic_conv(
        basic_conv(basic_conv(x, p["branch3x3dbl_1"]), p["branch3x3dbl_2"]),
        p["branch3x3dbl_3"])
    bp = max_pool2d(x, 3, 2)
    return jnp.concatenate([b3, bd, bp], axis=-1)


def inception_c(x, p):
    f = p["stem_1x1"]                                 # branch1x1 | 7x7_1 | 7x7dbl_1
    b1, b7, bd = _split_channels(basic_conv(x, f), f["splits"])
    b7 = basic_conv(basic_conv(b7, p["branch7x7_2"]), p["branch7x7_3"])
    bd = basic_conv(bd, p["branch7x7dbl_2"])
    bd = basic_conv(bd, p["branch7x7dbl_3"])
    bd = basic_conv(bd, p["branch7x7dbl_4"])
    bd = basic_conv(bd, p["branch7x7dbl_5"])
    bp = basic_conv(avg_pool_3x3_s1_p1(x), p["branch_pool"])
    return jnp.concatenate([b1, b7, bd, bp], axis=-1)


def inception_d(x, p):
    f = p["stem_1x1"]                                 # branch3x3_1 | 7x7x3_1
    b3, b7 = _split_channels(basic_conv(x, f), f["splits"])
    b3 = basic_conv(b3, p["branch3x3_2"])
    b7 = basic_conv(b7, p["branch7x7x3_2"])
    b7 = basic_conv(b7, p["branch7x7x3_3"])
    b7 = basic_conv(b7, p["branch7x7x3_4"])
    bp = max_pool2d(x, 3, 2)
    return jnp.concatenate([b3, b7, bp], axis=-1)


def inception_e(x, p):
    f = p["stem_1x1"]                                 # branch1x1 | 3x3_1 | 3x3dbl_1
    b1, b3, bd = _split_channels(basic_conv(x, f), f["splits"])
    b3 = jnp.concatenate(
        [basic_conv(b3, p["branch3x3_2a"]), basic_conv(b3, p["branch3x3_2b"])],
        axis=-1)
    bd = basic_conv(bd, p["branch3x3dbl_2"])
    bd = jnp.concatenate(
        [basic_conv(bd, p["branch3x3dbl_3a"]),
         basic_conv(bd, p["branch3x3dbl_3b"])], axis=-1)
    bp = basic_conv(avg_pool_3x3_s1_p1(x), p["branch_pool"])
    return jnp.concatenate([b1, b3, bd, bp], axis=-1)


def inception3_forward(x_nchw, p):
    """Eval-mode Inception3 forward. x_nchw: (N, 3, H, W) float32."""
    x = jnp.transpose(x_nchw, (0, 2, 3, 1)).astype(jnp.bfloat16)   # NHWC bf16
    x = basic_conv(x, p["Conv2d_1a_3x3"])
    x = basic_conv(x, p["Conv2d_2a_3x3"])
    x = basic_conv(x, p["Conv2d_2b_3x3"])
    x = max_pool2d(x, 3, 2)
    x = basic_conv(x, p["Conv2d_3b_1x1"])
    x = basic_conv(x, p["Conv2d_4a_3x3"])
    x = max_pool2d(x, 3, 2)
    x = inception_a(x, p["Mixed_5b"])
    x = inception_a(x, p["Mixed_5c"])
    x = inception_a(x, p["Mixed_5d"])
    x = inception_b(x, p["Mixed_6a"])
    x = inception_c(x, p["Mixed_6b"])
    x = inception_c(x, p["Mixed_6c"])
    x = inception_c(x, p["Mixed_6d"])
    x = inception_c(x, p["Mixed_6e"])
    x = inception_d(x, p["Mixed_7a"])
    x = inception_e(x, p["Mixed_7b"])
    x = inception_e(x, p["Mixed_7c"])
    feat = global_avg_pool(x)                         # (N, 2048)
    # Dropout(p=0.5) is identity in eval mode.
    logits = conv_matmul(feat.reshape(1, feat.shape[0], feat.shape[1]),
                         p["fc_wk"], p["fc_scale"], p["fc_b"],
                         apply_relu=False, out_dtype=jnp.float32)
    return logits


if __name__ == "__main__":
    # Smallest spatial size the valid stride-2 chain supports is 75.
    key = jax.random.PRNGKey(0)
    x = jax.random.normal(key, (2, 3, 75, 75), jnp.float32)

    pg = ParamGen(seed=0)
    params = make_inception3(pg, num_classes=1000)

    logits = inception3_forward(x, params)
    logits = jax.block_until_ready(logits)

    assert logits.shape == (2, 1000), logits.shape
    assert bool(jnp.all(jnp.isfinite(logits)))
    print("KERNEL_OK")
</pallas_src>

<mosaic_0001>
module attributes {stable_mosaic.version = 11 : i64} {
  func.func @_matmul_bn_act_kernel(%arg0: i32, %arg1: i32, %arg2: i32, %arg3: memref<1x512x27xbf16, #tpu.memory_space<vmem>>, %arg4: memref<1x27x128xbf16, #tpu.memory_space<vmem>>, %arg5: memref<1x128xf32, #tpu.memory_space<vmem>>, %arg6: memref<1x128xf32, #tpu.memory_space<vmem>>, %arg7: memref<512x128xbf16, #tpu.memory_space<vmem>>) attributes {dimension_semantics = [#tpu.dimension_semantics<parallel>, #tpu.dimension_semantics<parallel>, #tpu.dimension_semantics<arbitrary>], iteration_bounds = array<i64: 6, 1, 1>, scalar_prefetch = 0 : i64, scratch_operands = 0 : i64, tpu.core_type = #tpu.core_type<tc>, window_params = [{transform_indices = @transform_0, window_bounds = array<i64: 1, 512, 27>}, {transform_indices = @transform_1, window_bounds = array<i64: 1, 27, 128>}, {transform_indices = @transform_2, window_bounds = array<i64: 1, 128>}, {transform_indices = @transform_3, window_bounds = array<i64: 1, 128>}, {transform_indices = @transform_4, window_bounds = array<i64: 512, 128>}]} {
    %c0 = arith.constant 0 : index
    %c0_0 = arith.constant 0 : index
    %c0_1 = arith.constant 0 : index
    %0 = vector.load %arg3[%c0, %c0_0, %c0_1] : memref<1x512x27xbf16, #tpu.memory_space<vmem>>, vector<1x512x27xbf16>
    %1 = vector.shape_cast %0 : vector<1x512x27xbf16> to vector<512x27xbf16>
    %c0_2 = arith.constant 0 : index
    %c0_3 = arith.constant 0 : index
    %c0_4 = arith.constant 0 : index
    %2 = vector.load %arg4[%c0_2, %c0_3, %c0_4] : memref<1x27x128xbf16, #tpu.memory_space<vmem>>, vector<1x27x128xbf16>
    %3 = vector.shape_cast %2 : vector<1x27x128xbf16> to vector<27x128xbf16>
    %cst = arith.constant dense<0.000000e+00> : vector<512x128xf32>
    %4 = tpu.matmul %1, %3, %cst {dimension_numbers = #tpu.dot_dimension_numbers<[1], [0], [0], [1], [0, 0, 1, 1], [], []>} : vector<512x27xbf16>, vector<27x128xbf16>, vector<512x128xf32> -> vector<512x128xf32>
    %c0_5 = arith.constant 0 : index
    %c0_6 = arith.constant 0 : index
    %5 = vector.load %arg5[%c0_5, %c0_6] : memref<1x128xf32, #tpu.memory_space<vmem>>, vector<1x128xf32>
    %6 = vector.broadcast %5 : vector<1x128xf32> to vector<512x128xf32>
    %7 = arith.mulf %4, %6 : vector<512x128xf32>
    %c0_7 = arith.constant 0 : index
    %c0_8 = arith.constant 0 : index
    %8 = vector.load %arg6[%c0_7, %c0_8] : memref<1x128xf32, #tpu.memory_space<vmem>>, vector<1x128xf32>
    %9 = vector.broadcast %8 : vector<1x128xf32> to vector<512x128xf32>
    %10 = arith.addf %7, %9 : vector<512x128xf32>
    %cst_9 = arith.constant 0.000000e+00 : f32
    %11 = vector.broadcast %cst_9 : f32 to vector<512x128xf32>
    %12 = arith.maximumf %10, %11 : vector<512x128xf32>
    %13 = arith.truncf %12 : vector<512x128xf32> to vector<512x128xbf16>
    %c0_10 = arith.constant 0 : index
    %c0_11 = arith.constant 0 : index
    %14 = vector.load %arg7[%c0_10, %c0_11] : memref<512x128xbf16, #tpu.memory_space<vmem>>, vector<512x128xbf16>
    tpu.vector_store %arg7[%c0_10, %c0_11], %13 {strides = array<i32>} : memref<512x128xbf16, #tpu.memory_space<vmem>>, vector<512x128xbf16>,
    return
  }
  func.func @transform_0(%arg0: i32, %arg1: i32, %arg2: i32) -> (i32, i32, i32) {
    %c0_i32 = arith.constant 0 : i32
    %c0_i32_0 = arith.constant 0 : i32
    return %arg2, %arg0, %c0_i32 : i32, i32, i32
  }
  func.func @transform_1(%arg0: i32, %arg1: i32, %arg2: i32) -> (i32, i32, i32) {
    %c0_i32 = arith.constant 0 : i32
    %c0_i32_0 = arith.constant 0 : i32
    return %arg2, %c0_i32, %arg1 : i32, i32, i32
  }
  func.func @transform_2(%arg0: i32, %arg1: i32, %arg2: i32) -> (i32, i32) {
    %c0_i32 = arith.constant 0 : i32
    %c0_i32_0 = arith.constant 0 : i32
    return %c0_i32, %arg1 : i32, i32
  }
  func.func @transform_3(%arg0: i32, %arg1: i32, %arg2: i32) -> (i32, i32) {
    %c0_i32 = arith.constant 0 : i32
    %c0_i32_0 = arith.constant 0 : i32
    return %c0_i32, %arg1 : i32, i32
  }
  func.func @transform_4(%arg0: i32, %arg1: i32, %arg2: i32) -> (i32, i32) {
    %c0_i32 = arith.constant 0 : i32
    return %arg0, %arg1 : i32, i32
  }
}

</mosaic_0001>

<bundles_post_ra>
// kernel: _conv_impl.1
= control target key start
LH: loop header
LB: loop body
LE: loop exit
PB: predicated region body
PF: predicated region fallthrough
CT: control target
= control target key end

     0   :  { %s2205_s15 = smov 0   ;;  %s2207_s16 = smov 0   ;;  %s2489_s0 = inlined_call_operand.vmem [shape: bf16[1,3072,27], index: 0, kind: input, shape index: {}]   ;;  %s2490_s1 = inlined_call_operand.vmem [shape: bf16[1,27,128], index: 1, kind: input, shape index: {}]   ;;  %s2491_s2 = inlined_call_operand.vmem [shape: f32[1,128], index: 2, kind: input, shape index: {}]   ;;  %s2492_s3 = inlined_call_operand.vmem [shape: f32[1,128], index: 3, kind: input, shape index: {}]   ;;  %s2493_s4 = inlined_call_operand.vmem [shape: bf16[3072,128], index: 4, kind: output, shape index: {}]  }
   0x1   :  { %s2209_s17 = smov 0  }
   0x2 LB: > { %s33_s18 = sadd.s32 1, %s2173_s16  ;;  %p1596_p0 = scmp.ge.s32.totalorder %s2177_s17, 1  ;;  %s2177_s17 = sphi %s2209_s17, %s14_s17   ;;  %s2173_s16 = sphi %s2207_s16, %s2495_s16   ;;  %s2169_s15 = sphi %s2205_s15, %s2494_s15  }
   0x3   : > { %p35_p1 = scmp.ge.s32.totalorder %s33_s18, 6  ;;  %p221_p2 = scmp.lt.s32.totalorder %s2177_s17, 7 }
   0x5   : > { %s2497_s18 = smov (%p35_p1, %s33_s18), 0  ;;  %p222_p3 = pnand %p1596_p0, %p221_p2 }
   0x6   : > { %s1597_s21 = sshll.u32 (!%p222_p3), %s2169_s15, 6 }
   0x7   : > { %225 = sbr.rel (%p222_p3) target bundleno = 289 (0x121), region = 36  ;;  %p271_p4 = scmp.lt.s32.totalorder (!%p222_p3), %s1597_s21, 383 }
   0xc   : > { %v2121_v0 = vld [vmem:[%s2490_s1 + $0x8] sm:$0x3f]   ;;  %vm638_vm0 = vcmask 1044480   ;;  %vm639_vm1 = vcmask 1045504   ;;  %v2179_v1 = vmov 65535   ;;  %v2122_v5 = vld [vmem:[%s2490_s1] sm:$0xff]  }
   0xd   : > { %v640_v2 = vsel %vm638_vm0, 4294967295, %v2179_v1  ;;  %s2499_s21 = smov (!%p271_p4, %s1597_s21), 383  ;;  %vm541_vm2 = vcmask 220160   ;;  %v2306_v38 = vld [vmem:[%s2491_s2] ss:$0 sm:$0xff] }
   0xe   : > { %v641_v3 = vsel %vm639_vm1, %v640_v2, 0  ;;  %s1598_s24 = sshll.u32 %s2499_s21, 2  ;;  %v2313_v43 = vld [vmem:[%s2492_s3] ss:$0 sm:$0xff] }
   0xf   : > { %v643_v4 = vand.u32 %v2121_v0, %v641_v3  ;;  %s2237_s27 = scalar_lea.vmem %s2489_s0, %s1598_s24  ;;  %s2336_s8 = scalar_lea.vmem %s2493_s4, %s1598_s24 }
  0x10   : > { %v2123_v6 = vld [vmem:[%s2237_s27] sm:$0xff]   ;;  %v2125_v8 = vld [vmem:[%s2237_s27 + $0x8] sm:$0xff]   ;;  %v2127_v10 = vld [vmem:[%s2237_s27 + $0x10] sm:$0xff]  }
  0x11   : > { %2024 = vmatprep.subr.bf16.mxu0 %v643_v4  ;;  %2092 = vmatprep.subr.bf16.mxu1 %v643_v4  ;;  %v2124_v7 = vld [vmem:[%s2237_s27 + $0x80] sm:$0xff]   ;;  %v2126_v9 = vld [vmem:[%s2237_s27 + $0x88] sm:$0xff]   ;;  %v2128_v11 = vld [vmem:[%s2237_s27 + $0x90] sm:$0xff]  }
  0x12   : > { %2025 = vmatpush3.bf16.msra.mxu0 %v643_v4  ;;  %2094 = vmatpush3.bf16.msra.mxu1 %v643_v4  ;;  %v2129_v12 = vld [vmem:[%s2237_s27 + $0x18] sm:$0xff]   ;;  %v2131_v14 = vld [vmem:[%s2237_s27 + $0x20] sm:$0xff]   ;;  %v2133_v16 = vld [vmem:[%s2237_s27 + $0x28] sm:$0xff]  }
  0x13   : > { %2026 = vmatprep.subr.bf16.mxu0 %v2122_v5  ;;  %2093 = vmatprep.subr.bf16.mxu1 %v2122_v5  ;;  %v2130_v13 = vld [vmem:[%s2237_s27 + $0x98] sm:$0xff]   ;;  %v2132_v15 = vld [vmem:[%s2237_s27 + $0xa0] sm:$0xff]   ;;  %v2134_v17 = vld [vmem:[%s2237_s27 + $0xa8] sm:$0xff]  }
  0x14   : > { %2028 = vmatprep.mubr.msk.bf16.mxu0 %vm541_vm2, %v2123_v6  ;;  %2060 = vmatprep.mubr.msk.bf16.mxu1 %vm541_vm2, %v2124_v7  ;;  %v2135_v18 = vld [vmem:[%s2237_s27 + $0x30] sm:$0xff]   ;;  %v2137_v20 = vld [vmem:[%s2237_s27 + $0x38] sm:$0xff]   ;;  %v2139_v22 = vld [vmem:[%s2237_s27 + $0x40] sm:$0xff]  }
  0x15   : > { %v2136_v19 = vld [vmem:[%s2237_s27 + $0xb0] sm:$0xff]   ;;  %v2138_v21 = vld [vmem:[%s2237_s27 + $0xb8] sm:$0xff]   ;;  %v2140_v23 = vld [vmem:[%s2237_s27 + $0xc0] sm:$0xff]  }
  0x16   : > { %2027 = vmatpush3.bf16.msra.mxu0 %v2122_v5  ;;  %2095 = vmatpush3.bf16.msra.mxu1 %v2122_v5  ;;  %v2141_v24 = vld [vmem:[%s2237_s27 + $0x48] sm:$0xff]   ;;  %v2143_v26 = vld [vmem:[%s2237_s27 + $0x50] sm:$0xff]   ;;  %v2145_v28 = vld [vmem:[%s2237_s27 + $0x58] sm:$0xff]  }
  0x17   : > { %v2142_v25 = vld [vmem:[%s2237_s27 + $0xc8] sm:$0xff]   ;;  %v2144_v27 = vld [vmem:[%s2237_s27 + $0xd0] sm:$0xff]   ;;  %v2146_v29 = vld [vmem:[%s2237_s27 + $0xd8] sm:$0xff]  }
  0x18   : > { %v2147_v30 = vld [vmem:[%s2237_s27 + $0x60] sm:$0xff]   ;;  %v2149_v32 = vld [vmem:[%s2237_s27 + $0x68] sm:$0xff]   ;;  %v2151_v34 = vld [vmem:[%s2237_s27 + $0x70] sm:$0xff]  }
  0x19   : > { %2029 = vmatmul.mubr.msk.bf16.vlgmr.msra.gmra.mxu0 %vm541_vm2, %v2125_v8  ;;  %2061 = vmatmul.mubr.msk.bf16.vlgmr.msra.gmra.mxu1 %vm541_vm2, %v2126_v9  ;;  %v2148_v31 = vld [vmem:[%s2237_s27 + $0xe0] sm:$0xff]   ;;  %v2150_v33 = vld [vmem:[%s2237_s27 + $0xe8] sm:$0xff]   ;;  %v2152_v35 = vld [vmem:[%s2237_s27 + $0xf0] sm:$0xff]  }
  0x1a   : > { %2032 = vmatprep.mubr.msk.bf16.mxu0 %vm541_vm2, %v2127_v10  ;;  %2064 = vmatprep.mubr.msk.bf16.mxu1 %vm541_vm2, %v2128_v11  ;;  %v2153_v36 = vld [vmem:[%s2237_s27 + $0x78] sm:$0xff]  }
  0x1b   : > { %v2154_v37 = vld [vmem:[%s2237_s27 + $0xf8] sm:$0xff]  }
  0x21   : > { %2033 = vmatmul.mubr.msk.bf16.gmra.mxu0 %vm541_vm2, %v2129_v12  ;;  %2065 = vmatmul.mubr.msk.bf16.gmra.mxu1 %vm541_vm2, %v2130_v13 }
  0x22   : > { %2036 = vmatprep.mubr.msk.bf16.mxu0 %vm541_vm2, %v2131_v14  ;;  %2068 = vmatprep.mubr.msk.bf16.mxu1 %vm541_vm2, %v2132_v15 }
  0x29   : > { %2037 = vmatmul.mubr.msk.bf16.gmra.mxu0 %vm541_vm2, %v2133_v16  ;;  %2069 = vmatmul.mubr.msk.bf16.gmra.mxu1 %vm541_vm2, %v2134_v17 }
  0x2a   : > { %2040 = vmatprep.mubr.msk.bf16.mxu0 %vm541_vm2, %v2135_v18  ;;  %2072 = vmatprep.mubr.msk.bf16.mxu1 %vm541_vm2, %v2136_v19 }
  0x31   : > { %2041 = vmatmul.mubr.msk.bf16.gmra.mxu0 %vm541_vm2, %v2137_v20  ;;  %2073 = vmatmul.mubr.msk.bf16.gmra.mxu1 %vm541_vm2, %v2138_v21 }
  0x32   : > { %2044 = vmatprep.mubr.msk.bf16.mxu0 %vm541_vm2, %v2139_v22  ;;  %2076 = vmatprep.mubr.msk.bf16.mxu1 %vm541_vm2, %v2140_v23 }
  0x39   : > { %2045 = vmatmul.mubr.msk.bf16.gmra.mxu0 %vm541_vm2, %v2141_v24  ;;  %2077 = vmatmul.mubr.msk.bf16.gmra.mxu1 %vm541_vm2, %v2142_v25 }
  0x3a   : > { %2048 = vmatprep.mubr.msk.bf16.mxu0 %vm541_vm2, %v2143_v26  ;;  %2080 = vmatprep.mubr.msk.bf16.mxu1 %vm541_vm2, %v2144_v27 }
  0x41   : > { %2049 = vmatmul.mubr.msk.bf16.gmra.mxu0 %vm541_vm2, %v2145_v28  ;;  %2081 = vmatmul.mubr.msk.bf16.gmra.mxu1 %vm541_vm2, %v2146_v29 }
  0x42   : > { %2052 = vmatprep.mubr.msk.bf16.mxu0 %vm541_vm2, %v2147_v30  ;;  %2084 = vmatprep.mubr.msk.bf16.mxu1 %vm541_vm2, %v2148_v31 }
  0x49   : > { %2053 = vmatmul.mubr.msk.bf16.gmra.mxu0 %vm541_vm2, %v2149_v32  ;;  %2085 = vmatmul.mubr.msk.bf16.gmra.mxu1 %vm541_vm2, %v2150_v33 }
  0x4a   : > { %2056 = vmatprep.mubr.msk.bf16.mxu0 %vm541_vm2, %v2151_v34  ;;  %2088 = vmatprep.mubr.msk.bf16.mxu1 %vm541_vm2, %v2152_v35 }
  0x51   : > { %2057 = vmatmul.mubr.msk.bf16.gmra.mxu0 %vm541_vm2, %v2153_v36  ;;  %2089 = vmatmul.mubr.msk.bf16.gmra.mxu1 %vm541_vm2, %v2154_v37 }
  0xd9   : > { %v2030_v39 = vpop.f32.mrf.mxu0  ;;  %v2062_v40 = vpop.f32.mrf.mxu1 }
  0xda   : > { %v943_v41 = vmul.f32 %v2030_v39, %v2306_v38  ;;  %v975_v42 = vmul.f32 %v2062_v40, %v2306_v38 }
  0xdb   : > { %v679_v44 = vpop.f32.mrf.mxu0  ;;  %v807_v45 = vpop.f32.mrf.mxu1 }
  0xdc   : > { %v941_v46 = vmul.f32 %v2306_v38, %v679_v44  ;;  %v973_v47 = vmul.f32 %v2306_v38, %v807_v45  ;;  %v1014_v50 = vadd.f32 %v2313_v43, %v943_v41  ;;  %v1046_v51 = vadd.f32 %v2313_v43, %v975_v42 }
  0xdd   : > { %v2031_v48 = vpop.f32.mrf.mxu0  ;;  %v2063_v49 = vpop.f32.mrf.mxu1 }
  0xde   : > { %v944_v52 = vmul.f32 %v2031_v48, %v2306_v38  ;;  %v976_v53 = vmul.f32 %v2063_v49, %v2306_v38  ;;  %v1012_v56 = vadd.f32 %v2313_v43, %v941_v46  ;;  %v1044_v57 = vadd.f32 %v2313_v43, %v973_v47 }
  0xdf   : > { %v682_v54 = vpop.f32.mrf.mxu0  ;;  %v810_v55 = vpop.f32.mrf.mxu1  ;;  %v1078_v0 = vmax.f32 %v1014_v50, 0.0  ;;  %v1110_v1 = vmax.f32 %v1046_v51, 0.0 }
  0xe0   : > { %v942_v58 = vmul.f32 %v2306_v38, %v682_v54  ;;  %v974_v59 = vmul.f32 %v2306_v38, %v810_v55  ;;  %v1015_v60 = vadd.f32 %v2313_v43, %v944_v52  ;;  %v1047_v61 = vadd.f32 %v2313_v43, %v976_v53 }
  0xe1   : > { %v2034_v62 = vpop.f32.mrf.mxu0  ;;  %v2066_v63 = vpop.f32.mrf.mxu1  ;;  %v1076_v10 = vmax.f32 %v1012_v56, 0.0  ;;  %v1108_v11 = vmax.f32 %v1044_v57, 0.0 }
  0xe2   : > { %v1013_v2 = vadd.f32 %v2313_v43, %v942_v58  ;;  %v1045_v3 = vadd.f32 %v2313_v43, %v974_v59  ;;  %v1079_v4 = vmax.f32 %v1015_v60, 0.0  ;;  %v1111_v5 = vmax.f32 %v1047_v61, 0.0 }
  0xe3   : > { %v947_v6 = vmul.f32 %v2034_v62, %v2306_v38  ;;  %v979_v7 = vmul.f32 %v2066_v63, %v2306_v38  ;;  %v695_v8 = vpop.f32.mrf.mxu0  ;;  %v823_v9 = vpop.f32.mrf.mxu1 }
  0xe4   : > { %v1077_v12 = vmax.f32 %v1013_v2, 0.0  ;;  %v1109_v13 = vmax.f32 %v1045_v3, 0.0  ;;  %v1807_v14 = vpack.c.bf16 %v1079_v4, %v1078_v0  ;;  %v1887_v15 = vpack.c.bf16 %v1111_v5, %v1110_v1 }
  0xe5   : > { %v945_v16 = vmul.f32 %v2306_v38, %v695_v8  ;;  %v977_v17 = vmul.f32 %v2306_v38, %v823_v9  ;;  %v2035_v18 = vpop.f32.mrf.mxu0  ;;  %v2067_v19 = vpop.f32.mrf.mxu1  ;;  %v1018_v22 = vadd.f32 %v2313_v43, %v947_v6  ;;  %v1050_v23 = vadd.f32 %v2313_v43, %v979_v7 }
  0xe6   : > { %v1802_v20 = vpack.c.bf16 %v1077_v12, %v1076_v10  ;;  %v1882_v21 = vpack.c.bf16 %v1109_v13, %v1108_v11  ;;  %1959 = vst [vmem:[%s2336_s8 + $0x8] sm:$0xff] %v1807_v14   ;;  %1975 = vst [vmem:[%s2336_s8 + $0x88] sm:$0xff] %v1887_v15   ;;  %v948_v24 = vmul.f32 %v2035_v18, %v2306_v38 }
  0xe7   : > { %v980_v25 = vmul.f32 %v2067_v19, %v2306_v38  ;;  %v698_v26 = vpop.f32.mrf.mxu0  ;;  %v826_v27 = vpop.f32.mrf.mxu1  ;;  %v1016_v28 = vadd.f32 %v2313_v43, %v945_v16  ;;  %v1048_v29 = vadd.f32 %v2313_v43, %v977_v17  ;;  %v1082_v41 = vmax.f32 %v1018_v22, 0.0 }
  0xe8   : > { %1803 = vst [vmem:[%s2336_s8] sm:$0xff] %v1802_v20   ;;  %1974 = vst [vmem:[%s2336_s8 + $0x80] sm:$0xff] %v1882_v21   ;;  %v946_v30 = vmul.f32 %v2306_v38, %v698_v26  ;;  %v978_v31 = vmul.f32 %v2306_v38, %v826_v27  ;;  %v1019_v32 = vadd.f32 %v2313_v43, %v948_v24  ;;  %v1114_v42 = vmax.f32 %v1050_v23, 0.0 }
  0xe9   : > { %v1051_v33 = vadd.f32 %v2313_v43, %v980_v25  ;;  %v2038_v34 = vpop.f32.mrf.mxu0  ;;  %v2070_v35 = vpop.f32.mrf.mxu1  ;;  %v1080_v48 = vmax.f32 %v1016_v28, 0.0  ;;  %v1112_v49 = vmax.f32 %v1048_v29, 0.0 }
  0xea   : > { %v1017_v36 = vadd.f32 %v2313_v43, %v946_v30  ;;  %v1049_v37 = vadd.f32 %v2313_v43, %v978_v31  ;;  %v951_v39 = vmul.f32 %v2038_v34, %v2306_v38  ;;  %v983_v40 = vmul.f32 %v2070_v35, %v2306_v38 }
  0xeb   : > { %v1083_v44 = vmax.f32 %v1019_v32, 0.0  ;;  %v1115_v45 = vmax.f32 %v1051_v33, 0.0  ;;  %v711_v46 = vpop.f32.mrf.mxu0  ;;  %v839_v47 = vpop.f32.mrf.mxu1 }
  0xec   : > { %v1081_v50 = vmax.f32 %v1017_v36, 0.0  ;;  %v1113_v51 = vmax.f32 %v1049_v37, 0.0  ;;  %v949_v54 = vmul.f32 %v2306_v38, %v711_v46  ;;  %v981_v55 = vmul.f32 %v2306_v38, %v839_v47 }
  0xed   : > { %v1817_v52 = vpack.c.bf16 %v1083_v44, %v1082_v41  ;;  %v1897_v53 = vpack.c.bf16 %v1115_v45, %v1114_v42  ;;  %v2039_v56 = vpop.f32.mrf.mxu0  ;;  %v2071_v57 = vpop.f32.mrf.mxu1  ;;  %v1022_v60 = vadd.f32 %v2313_v43, %v951_v39  ;;  %v1054_v61 = vadd.f32 %v2313_v43, %v983_v40 }
  0xee   : > { %v1812_v58 = vpack.c.bf16 %v1081_v50, %v1080_v48  ;;  %v1892_v59 = vpack.c.bf16 %v1113_v51, %v1112_v49  ;;  %v952_v62 = vmul.f32 %v2039_v56, %v2306_v38  ;;  %v984_v63 = vmul.f32 %v2071_v57, %v2306_v38 }
  0xef   : > { %1961 = vst [vmem:[%s2336_s8 + $0x18] sm:$0xff] %v1817_v52   ;;  %1977 = vst [vmem:[%s2336_s8 + $0x98] sm:$0xff] %v1897_v53   ;;  %v714_v0 = vpop.f32.mrf.mxu0  ;;  %v842_v1 = vpop.f32.mrf.mxu1  ;;  %v1020_v2 = vadd.f32 %v2313_v43, %v949_v54  ;;  %v1052_v3 = vadd.f32 %v2313_v43, %v981_v55  ;;  %v1086_v10 = vmax.f32 %v1022_v60, 0.0  ;;  %v1118_v11 = vmax.f32 %v1054_v61, 0.0 }
  0xf0   : > { %1960 = vst [vmem:[%s2336_s8 + $0x10] sm:$0xff] %v1812_v58   ;;  %1976 = vst [vmem:[%s2336_s8 + $0x90] sm:$0xff] %v1892_v59   ;;  %v950_v4 = vmul.f32 %v2306_v38, %v714_v0  ;;  %v982_v5 = vmul.f32 %v2306_v38, %v842_v1  ;;  %v1023_v6 = vadd.f32 %v2313_v43, %v952_v62 }
  0xf1   : > { %v1055_v7 = vadd.f32 %v2313_v43, %v984_v63  ;;  %v2042_v8 = vpop.f32.mrf.mxu0  ;;  %v2074_v9 = vpop.f32.mrf.mxu1  ;;  %v1084_v20 = vmax.f32 %v1020_v2, 0.0  ;;  %v1116_v21 = vmax.f32 %v1052_v3, 0.0 }
  0xf2   : > { %v1021_v12 = vadd.f32 %v2313_v43, %v950_v4  ;;  %v1053_v13 = vadd.f32 %v2313_v43, %v982_v5  ;;  %v1087_v14 = vmax.f32 %v1023_v6, 0.0  ;;  %v955_v16 = vmul.f32 %v2042_v8, %v2306_v38 }
  0xf3   : > { %v1119_v15 = vmax.f32 %v1055_v7, 0.0  ;;  %v987_v17 = vmul.f32 %v2074_v9, %v2306_v38  ;;  %v727_v18 = vpop.f32.mrf.mxu0  ;;  %v855_v19 = vpop.f32.mrf.mxu1 }
  0xf4   : > { %v1085_v22 = vmax.f32 %v1021_v12, 0.0  ;;  %v1117_v23 = vmax.f32 %v1053_v13, 0.0  ;;  %v1827_v24 = vpack.c.bf16 %v1087_v14, %v1086_v10  ;;  %v953_v26 = vmul.f32 %v2306_v38, %v727_v18 }
  0xf5   : > { %v1907_v25 = vpack.c.bf16 %v1119_v15, %v1118_v11  ;;  %v985_v27 = vmul.f32 %v2306_v38, %v855_v19  ;;  %v2043_v28 = vpop.f32.mrf.mxu0  ;;  %v2075_v29 = vpop.f32.mrf.mxu1  ;;  %v1026_v32 = vadd.f32 %v2313_v43, %v955_v16  ;;  %v1058_v33 = vadd.f32 %v2313_v43, %v987_v17 }
  0xf6   : > { %v1822_v30 = vpack.c.bf16 %v1085_v22, %v1084_v20  ;;  %v1902_v31 = vpack.c.bf16 %v1117_v23, %v1116_v21  ;;  %1963 = vst [vmem:[%s2336_s8 + $0x28] sm:$0xff] %v1827_v24   ;;  %v956_v34 = vmul.f32 %v2043_v28, %v2306_v38  ;;  %v988_v35 = vmul.f32 %v2075_v29, %v2306_v38 }
  0xf7   : > { %1979 = vst [vmem:[%s2336_s8 + $0xa8] sm:$0xff] %v1907_v25   ;;  %v730_v36 = vpop.f32.mrf.mxu0  ;;  %v858_v37 = vpop.f32.mrf.mxu1  ;;  %v1024_v39 = vadd.f32 %v2313_v43, %v953_v26  ;;  %v1056_v40 = vadd.f32 %v2313_v43, %v985_v27  ;;  %v1090_v52 = vmax.f32 %v1026_v32, 0.0  ;;  %v1122_v53 = vmax.f32 %v1058_v33, 0.0 }
  0xf8   : > { %1962 = vst [vmem:[%s2336_s8 + $0x20] sm:$0xff] %v1822_v30   ;;  %1978 = vst [vmem:[%s2336_s8 + $0xa0] sm:$0xff] %v1902_v31   ;;  %v954_v41 = vmul.f32 %v2306_v38, %v730_v36  ;;  %v986_v42 = vmul.f32 %v2306_v38, %v858_v37  ;;  %v1027_v44 = vadd.f32 %v2313_v43, %v956_v34 }
  0xf9   : > { %v1059_v45 = vadd.f32 %v2313_v43, %v988_v35  ;;  %v2046_v46 = vpop.f32.mrf.mxu0  ;;  %v2078_v47 = vpop.f32.mrf.mxu1  ;;  %v1088_v58 = vmax.f32 %v1024_v39, 0.0  ;;  %v1120_v59 = vmax.f32 %v1056_v40, 0.0 }
  0xfa   : > { %v1025_v48 = vadd.f32 %v2313_v43, %v954_v41  ;;  %v1057_v49 = vadd.f32 %v2313_v43, %v986_v42  ;;  %v959_v50 = vmul.f32 %v2046_v46, %v2306_v38  ;;  %v991_v51 = vmul.f32 %v2078_v47, %v2306_v38 }
  0xfb   : > { %v1091_v54 = vmax.f32 %v1027_v44, 0.0  ;;  %v1123_v55 = vmax.f32 %v1059_v45, 0.0  ;;  %v743_v56 = vpop.f32.mrf.mxu0  ;;  %v871_v57 = vpop.f32.mrf.mxu1 }
  0xfc   : > { %v1089_v60 = vmax.f32 %v1025_v48, 0.0  ;;  %v1121_v61 = vmax.f32 %v1057_v49, 0.0  ;;  %v957_v0 = vmul.f32 %v2306_v38, %v743_v56  ;;  %v989_v1 = vmul.f32 %v2306_v38, %v871_v57 }
  0xfd   : > { %v1837_v62 = vpack.c.bf16 %v1091_v54, %v1090_v52  ;;  %v1917_v63 = vpack.c.bf16 %v1123_v55, %v1122_v53  ;;  %v2047_v2 = vpop.f32.mrf.mxu0  ;;  %v2079_v3 = vpop.f32.mrf.mxu1  ;;  %v1030_v6 = vadd.f32 %v2313_v43, %v959_v50  ;;  %v1062_v7 = vadd.f32 %v2313_v43, %v991_v51 }
  0xfe   : > { %v1832_v4 = vpack.c.bf16 %v1089_v60, %v1088_v58  ;;  %v1912_v5 = vpack.c.bf16 %v1121_v61, %v1120_v59  ;;  %v960_v8 = vmul.f32 %v2047_v2, %v2306_v38  ;;  %v992_v9 = vmul.f32 %v2079_v3, %v2306_v38 }
  0xff   : > { %1965 = vst [vmem:[%s2336_s8 + $0x38] sm:$0xff] %v1837_v62   ;;  %1981 = vst [vmem:[%s2336_s8 + $0xb8] sm:$0xff] %v1917_v63   ;;  %v746_v10 = vpop.f32.mrf.mxu0  ;;  %v874_v11 = vpop.f32.mrf.mxu1  ;;  %v1028_v12 = vadd.f32 %v2313_v43, %v957_v0  ;;  %v1060_v13 = vadd.f32 %v2313_v43, %v989_v1  ;;  %v1094_v20 = vmax.f32 %v1030_v6, 0.0  ;;  %v1126_v21 = vmax.f32 %v1062_v7, 0.0 }
 0x100   : > { %1964 = vst [vmem:[%s2336_s8 + $0x30] sm:$0xff] %v1832_v4   ;;  %1980 = vst [vmem:[%s2336_s8 + $0xb0] sm:$0xff] %v1912_v5   ;;  %v958_v14 = vmul.f32 %v2306_v38, %v746_v10  ;;  %v990_v15 = vmul.f32 %v2306_v38, %v874_v11  ;;  %v1031_v16 = vadd.f32 %v2313_v43, %v960_v8 }
 0x101   : > { %v1063_v17 = vadd.f32 %v2313_v43, %v992_v9  ;;  %v2050_v18 = vpop.f32.mrf.mxu0  ;;  %v2082_v19 = vpop.f32.mrf.mxu1  ;;  %v1092_v30 = vmax.f32 %v1028_v12, 0.0  ;;  %v1124_v31 = vmax.f32 %v1060_v13, 0.0 }
 0x102   : > { %v1029_v22 = vadd.f32 %v2313_v43, %v958_v14  ;;  %v1061_v23 = vadd.f32 %v2313_v43, %v990_v15  ;;  %v1095_v24 = vmax.f32 %v1031_v16, 0.0  ;;  %v963_v26 = vmul.f32 %v2050_v18, %v2306_v38 }
 0x103   : > { %v1127_v25 = vmax.f32 %v1063_v17, 0.0  ;;  %v995_v27 = vmul.f32 %v2082_v19, %v2306_v38  ;;  %v759_v28 = vpop.f32.mrf.mxu0  ;;  %v887_v29 = vpop.f32.mrf.mxu1 }
 0x104   : > { %v1093_v32 = vmax.f32 %v1029_v22, 0.0  ;;  %v1125_v33 = vmax.f32 %v1061_v23, 0.0  ;;  %v1847_v34 = vpack.c.bf16 %v1095_v24, %v1094_v20  ;;  %v961_v36 = vmul.f32 %v2306_v38, %v759_v28 }
 0x105   : > { %v1927_v35 = vpack.c.bf16 %v1127_v25, %v1126_v21  ;;  %v993_v37 = vmul.f32 %v2306_v38, %v887_v29  ;;  %v2051_v39 = vpop.f32.mrf.mxu0  ;;  %v2083_v40 = vpop.f32.mrf.mxu1  ;;  %v1034_v44 = vadd.f32 %v2313_v43, %v963_v26  ;;  %v1066_v45 = vadd.f32 %v2313_v43, %v995_v27 }
 0x106   : > { %v1842_v41 = vpack.c.bf16 %v1093_v32, %v1092_v30  ;;  %v1922_v42 = vpack.c.bf16 %v1125_v33, %v1124_v31  ;;  %1967 = vst [vmem:[%s2336_s8 + $0x48] sm:$0xff] %v1847_v34   ;;  %v964_v46 = vmul.f32 %v2051_v39, %v2306_v38  ;;  %v996_v47 = vmul.f32 %v2083_v40, %v2306_v38 }
 0x107   : > { %1983 = vst [vmem:[%s2336_s8 + $0xc8] sm:$0xff] %v1927_v35   ;;  %v762_v48 = vpop.f32.mrf.mxu0  ;;  %v890_v49 = vpop.f32.mrf.mxu1  ;;  %v1032_v50 = vadd.f32 %v2313_v43, %v961_v36  ;;  %v1064_v51 = vadd.f32 %v2313_v43, %v993_v37  ;;  %v1098_v62 = vmax.f32 %v1034_v44, 0.0  ;;  %v1130_v63 = vmax.f32 %v1066_v45, 0.0 }
 0x108   : > { %1966 = vst [vmem:[%s2336_s8 + $0x40] sm:$0xff] %v1842_v41   ;;  %1982 = vst [vmem:[%s2336_s8 + $0xc0] sm:$0xff] %v1922_v42   ;;  %v962_v52 = vmul.f32 %v2306_v38, %v762_v48  ;;  %v994_v53 = vmul.f32 %v2306_v38, %v890_v49  ;;  %v1035_v54 = vadd.f32 %v2313_v43, %v964_v46 }
 0x109   : > { %v1067_v55 = vadd.f32 %v2313_v43, %v996_v47  ;;  %v2054_v56 = vpop.f32.mrf.mxu0  ;;  %v2086_v57 = vpop.f32.mrf.mxu1  ;;  %v1096_v4 = vmax.f32 %v1032_v50, 0.0  ;;  %v1128_v5 = vmax.f32 %v1064_v51, 0.0 }
 0x10a   : > { %v1033_v58 = vadd.f32 %v2313_v43, %v962_v52  ;;  %v1065_v59 = vadd.f32 %v2313_v43, %v994_v53  ;;  %v967_v60 = vmul.f32 %v2054_v56, %v2306_v38  ;;  %v999_v61 = vmul.f32 %v2086_v57, %v2306_v38 }
 0x10b   : > { %v1099_v0 = vmax.f32 %v1035_v54, 0.0  ;;  %v1131_v1 = vmax.f32 %v1067_v55, 0.0  ;;  %v775_v2 = vpop.f32.mrf.mxu0  ;;  %v903_v3 = vpop.f32.mrf.mxu1 }
 0x10c   : > { %v1097_v6 = vmax.f32 %v1033_v58, 0.0  ;;  %v1129_v7 = vmax.f32 %v1065_v59, 0.0  ;;  %v965_v10 = vmul.f32 %v2306_v38, %v775_v2  ;;  %v997_v11 = vmul.f32 %v2306_v38, %v903_v3 }
 0x10d   : > { %v1857_v8 = vpack.c.bf16 %v1099_v0, %v1098_v62  ;;  %v1937_v9 = vpack.c.bf16 %v1131_v1, %v1130_v63  ;;  %v2055_v12 = vpop.f32.mrf.mxu0  ;;  %v2087_v13 = vpop.f32.mrf.mxu1  ;;  %v1038_v16 = vadd.f32 %v2313_v43, %v967_v60  ;;  %v1070_v17 = vadd.f32 %v2313_v43, %v999_v61 }
 0x10e   : > { %v1852_v14 = vpack.c.bf16 %v1097_v6, %v1096_v4  ;;  %v1932_v15 = vpack.c.bf16 %v1129_v7, %v1128_v5  ;;  %v968_v18 = vmul.f32 %v2055_v12, %v2306_v38  ;;  %v1000_v19 = vmul.f32 %v2087_v13, %v2306_v38 }
 0x10f   : > { %1969 = vst [vmem:[%s2336_s8 + $0x58] sm:$0xff] %v1857_v8   ;;  %1985 = vst [vmem:[%s2336_s8 + $0xd8] sm:$0xff] %v1937_v9   ;;  %v778_v20 = vpop.f32.mrf.mxu0  ;;  %v906_v21 = vpop.f32.mrf.mxu1  ;;  %v1036_v22 = vadd.f32 %v2313_v43, %v965_v10  ;;  %v1068_v23 = vadd.f32 %v2313_v43, %v997_v11  ;;  %v1102_v30 = vmax.f32 %v1038_v16, 0.0  ;;  %v1134_v31 = vmax.f32 %v1070_v17, 0.0 }
 0x110   : > { %1968 = vst [vmem:[%s2336_s8 + $0x50] sm:$0xff] %v1852_v14   ;;  %1984 = vst [vmem:[%s2336_s8 + $0xd0] sm:$0xff] %v1932_v15   ;;  %v966_v24 = vmul.f32 %v2306_v38, %v778_v20  ;;  %v998_v25 = vmul.f32 %v2306_v38, %v906_v21  ;;  %v1039_v26 = vadd.f32 %v2313_v43, %v968_v18 }
 0x111   : > { %v1071_v27 = vadd.f32 %v2313_v43, %v1000_v19  ;;  %v2058_v28 = vpop.f32.mrf.mxu0  ;;  %v2090_v29 = vpop.f32.mrf.mxu1  ;;  %v1100_v41 = vmax.f32 %v1036_v22, 0.0  ;;  %v1132_v42 = vmax.f32 %v1068_v23, 0.0 }
 0x112   : > { %v1037_v32 = vadd.f32 %v2313_v43, %v966_v24  ;;  %v1069_v33 = vadd.f32 %v2313_v43, %v998_v25  ;;  %v1103_v34 = vmax.f32 %v1039_v26, 0.0  ;;  %v971_v36 = vmul.f32 %v2058_v28, %v2306_v38 }
 0x113   : > { %v1135_v35 = vmax.f32 %v1071_v27, 0.0  ;;  %v1003_v37 = vmul.f32 %v2090_v29, %v2306_v38  ;;  %v791_v39 = vpop.f32.mrf.mxu0  ;;  %v919_v40 = vpop.f32.mrf.mxu1 }
 0x114   : > { %v1101_v44 = vmax.f32 %v1037_v32, 0.0  ;;  %v1133_v45 = vmax.f32 %v1069_v33, 0.0  ;;  %v1867_v46 = vpack.c.bf16 %v1103_v34, %v1102_v30  ;;  %v969_v48 = vmul.f32 %v2306_v38, %v791_v39 }
 0x115   : > { %v1947_v47 = vpack.c.bf16 %v1135_v35, %v1134_v31  ;;  %v1001_v49 = vmul.f32 %v2306_v38, %v919_v40  ;;  %v2059_v50 = vpop.f32.mrf.mxu0  ;;  %v2091_v51 = vpop.f32.mrf.mxu1  ;;  %v1042_v54 = vadd.f32 %v2313_v43, %v971_v36  ;;  %v1074_v55 = vadd.f32 %v2313_v43, %v1003_v37 }
 0x116   : > { %v1862_v52 = vpack.c.bf16 %v1101_v44, %v1100_v41  ;;  %v1942_v53 = vpack.c.bf16 %v1133_v45, %v1132_v42  ;;  %1971 = vst [vmem:[%s2336_s8 + $0x68] sm:$0xff] %v1867_v46   ;;  %v972_v56 = vmul.f32 %v2059_v50, %v2306_v38  ;;  %v1004_v57 = vmul.f32 %v2091_v51, %v2306_v38 }
 0x117   : > { %1987 = vst [vmem:[%s2336_s8 + $0xe8] sm:$0xff] %v1947_v47   ;;  %v794_v58 = vpop.f32.mrf.mxu0  ;;  %v922_v59 = vpop.f32.mrf.mxu1  ;;  %v1040_v60 = vadd.f32 %v2313_v43, %v969_v48  ;;  %v1072_v61 = vadd.f32 %v2313_v43, %v1001_v49  ;;  %v1106_v4 = vmax.f32 %v1042_v54, 0.0  ;;  %v1138_v5 = vmax.f32 %v1074_v55, 0.0 }
 0x118   : > { %1970 = vst [vmem:[%s2336_s8 + $0x60] sm:$0xff] %v1862_v52   ;;  %1986 = vst [vmem:[%s2336_s8 + $0xe0] sm:$0xff] %v1942_v53   ;;  %v970_v62 = vmul.f32 %v2306_v38, %v794_v58  ;;  %v1002_v63 = vmul.f32 %v2306_v38, %v922_v59  ;;  %v1043_v0 = vadd.f32 %v2313_v43, %v972_v56 }
 0x119   : > { %v1075_v1 = vadd.f32 %v2313_v43, %v1004_v57  ;;  %v1104_v8 = vmax.f32 %v1040_v60, 0.0  ;;  %v1136_v9 = vmax.f32 %v1072_v61, 0.0 }
 0x11a   : > { %v1041_v2 = vadd.f32 %v2313_v43, %v970_v62  ;;  %v1073_v3 = vadd.f32 %v2313_v43, %v1002_v63  ;;  %v1107_v6 = vmax.f32 %v1043_v0, 0.0 }
 0x11b   : > { %v1139_v7 = vmax.f32 %v1075_v1, 0.0 }
 0x11c   : > { %v1105_v10 = vmax.f32 %v1041_v2, 0.0  ;;  %v1137_v38 = vmax.f32 %v1073_v3, 0.0  ;;  %v1877_v11 = vpack.c.bf16 %v1107_v6, %v1106_v4 }
 0x11d   : > { %v1957_v12 = vpack.c.bf16 %v1139_v7, %v1138_v5 }
 0x11e   : > { %v1872_v13 = vpack.c.bf16 %v1105_v10, %v1104_v8  ;;  %v1952_v14 = vpack.c.bf16 %v1137_v38, %v1136_v9  ;;  %1973 = vst [vmem:[%s2336_s8 + $0x78] sm:$0xff] %v1877_v11  }
 0x11f   : > { %1989 = vst [vmem:[%s2336_s8 + $0xf8] sm:$0xff] %v1957_v12  }
 0x120   : > { %1972 = vst [vmem:[%s2336_s8 + $0x70] sm:$0xff] %v1872_v13   ;;  %1988 = vst [vmem:[%s2336_s8 + $0xf0] sm:$0xff] %v1952_v14  }
 0x121 PF: > { %s14_s17 = sadd.s32 1, %s2177_s17   ;;  %s2494_s15 = smov %s2173_s16 }
 0x122   : > { %p11_p5 = scmp.ge.s32.totalorder %s14_s17, 8   ;;  %s2495_s16 = smov %s2497_s18 }
 0x124   :  { %13 = sbr.rel (!%p11_p5) target bundleno = 2 (0x2), region = 75 }

</bundles_post_ra>
